<compile_context>
chip_gen: v7x
topology: tpu7x:2x2x1
jax: 0.10.0
libtpu: 0.0.40
codegen_flags: <defaults>
</compile_context>

<pallas_src>
import functools

import jax
import jax.numpy as jnp
from jax.experimental import pallas as pl
from jax.experimental.pallas import tpu as pltpu

IN_F = 32
HIDDEN = 128
OUT_F = 10


def _mlp_kernel(x_ref, w1_ref, b1_ref, w2_ref, b2_ref, o_ref):
    # h = relu(x @ W1 + b1): bf16 MXU operands, f32 accumulation, f32 bias/ReLU.
    x = x_ref[...].astype(jnp.bfloat16)          # no-op if caller already passes bf16
    h = jnp.dot(x, w1_ref[...], preferred_element_type=jnp.float32)
    h = jnp.maximum(h + b1_ref[...], 0.0)
    # out = h @ W2 + b2 written directly as a narrow (tile_b, 10) block.
    out = jnp.dot(h.astype(jnp.bfloat16), w2_ref[...],
                  preferred_element_type=jnp.float32)
    o_ref[...] = (out + b2_ref[...]).astype(o_ref.dtype)


def prepare_params(w1, b1, w2, b2):
    """One-time parameter prep from PyTorch nn.Linear layouts.

    w1: (128, 32), b1: (128,), w2: (10, 128), b2: (10,)  ->
    w1_t: (32, 128) bf16, b1_r: (1, 128) f32, w2_t: (128, 10) bf16, b2_r: (1, 10) f32.
    """
    w1_t = jnp.asarray(w1, jnp.float32).T.astype(jnp.bfloat16)   # (32, 128)
    b1_r = jnp.asarray(b1, jnp.float32).reshape(1, HIDDEN)       # (1, 128)
    w2_t = jnp.asarray(w2, jnp.float32).T.astype(jnp.bfloat16)   # (128, 10)
    b2_r = jnp.asarray(b2, jnp.float32).reshape(1, OUT_F)        # (1, 10)
    return w1_t, b1_r, w2_t, b2_r


def _round_up(n, m):
    return (n + m - 1) // m * m


def toy_model_forward(x, params, *, max_tile_b=2048, out_dtype=jnp.bfloat16):
    """x: (B, 32) f32 or bf16. params: output of prepare_params. Returns (B, 10) out_dtype."""
    w1_t, b1_r, w2_t, b2_r = params
    B = x.shape[0]

    # Batch tile: multiple of 8 (sublane), capped so the grid has >= 2 steps when B is
    # large enough (keeps both v7x TensorCores busy), and at most max_tile_b rows.
    tile_b = min(max_tile_b, max(_round_up(pl.cdiv(B, 2), 8), 8))
    grid_b = pl.cdiv(B, tile_b)     # ragged trailing block handled by Pallas (no jnp.pad)

    out_bytes = jnp.dtype(out_dtype).itemsize
    flops = 2 * B * (IN_F * HIDDEN + HIDDEN * OUT_F)
    bytes_accessed = int(B * IN_F * x.dtype.itemsize          # x in
                         + w1_t.size * 2 + b1_r.size * 4      # weights (bf16) + biases (f32)
                         + w2_t.size * 2 + b2_r.size * 4
                         + B * OUT_F * out_bytes)              # narrow out

    return pl.pallas_call(
        _mlp_kernel,
        out_shape=jax.ShapeDtypeStruct((B, OUT_F), out_dtype),
        grid=(grid_b,),
        in_specs=[
            pl.BlockSpec((tile_b, IN_F), lambda i: (i, 0)),
            pl.BlockSpec((IN_F, HIDDEN), lambda i: (0, 0)),
            pl.BlockSpec((1, HIDDEN), lambda i: (0, 0)),
            pl.BlockSpec((HIDDEN, OUT_F), lambda i: (0, 0)),
            pl.BlockSpec((1, OUT_F), lambda i: (0, 0)),
        ],
        out_specs=pl.BlockSpec((tile_b, OUT_F), lambda i: (i, 0)),
        compiler_params=pltpu.CompilerParams(
            dimension_semantics=("parallel",),
            vmem_limit_bytes=32 * 1024 * 1024),   # covers big tiles on v5e's 16 MiB default
        cost_estimate=pl.CostEstimate(
            flops=flops, transcendentals=0, bytes_accessed=bytes_accessed),
    )(x, w1_t, b1_r, w2_t, b2_r)


def _ref_forward_matched(x, w1, b1, w2, b2):
    """Pure-JAX reference with matching bf16-operand / f32-accumulate / bf16-output rounding."""
    xb = x.astype(jnp.bfloat16).astype(jnp.float32)
    w1b = w1.astype(jnp.bfloat16).astype(jnp.float32)
    w2b = w2.astype(jnp.bfloat16).astype(jnp.float32)
    h = jnp.maximum(xb @ w1b.T + b1, 0.0)
    hb = h.astype(jnp.bfloat16).astype(jnp.float32)
    out = hb @ w2b.T + b2
    return out.astype(jnp.bfloat16).astype(jnp.float32)


if __name__ == "__main__":
    key = jax.random.PRNGKey(0)
    kx, kw1, kb1, kw2, kb2 = jax.random.split(key, 5)

    B = 200   # deliberately not a multiple of the tile: exercises the ragged trailing block
    x = jax.random.normal(kx, (B, IN_F), dtype=jnp.float32)

    # nn.Linear layouts: Linear(32,128): weight (128,32), bias (128,)
    #                    Linear(128,10): weight (10,128), bias (10,)
    w1 = jax.random.normal(kw1, (HIDDEN, IN_F), dtype=jnp.float32) * 0.1
    b1 = jax.random.normal(kb1, (HIDDEN,), dtype=jnp.float32) * 0.01
    w2 = jax.random.normal(kw2, (OUT_F, HIDDEN), dtype=jnp.float32) * 0.1
    b2 = jax.random.normal(kb2, (OUT_F,), dtype=jnp.float32) * 0.01

    # One-time parameter prep, then jit the forward.
    params = prepare_params(w1, b1, w2, b2)
    fwd = jax.jit(functools.partial(toy_model_forward, params=params))

    # Feed bf16 activations (halves input HBM traffic); f32 would also work.
    out = jax.block_until_ready(fwd(x.astype(jnp.bfloat16)))
    assert out.shape == (B, OUT_F)
    assert out.dtype == jnp.bfloat16

    out_f32 = out.astype(jnp.float32)

    # Precision-matched reference (bf16 operands, f32 accumulation, bf16 output).
    ref = _ref_forward_matched(x, w1, b1, w2, b2)
    max_err = jnp.max(jnp.abs(out_f32 - ref))
    assert jnp.allclose(out_f32, ref, atol=2e-2, rtol=2e-2), f"max abs err {max_err}"

    # Loose sanity check against the full-f32 PyTorch-equivalent forward.
    ref_f32 = jnp.maximum(x @ w1.T + b1, 0.0) @ w2.T + b2
    assert jnp.allclose(out_f32, ref_f32, atol=6e-2, rtol=6e-2)

    print("KERNEL_OK")
</pallas_src>

<mosaic_0001>
module attributes {stable_mosaic.version = 11 : i64} {
  func.func @_mlp_kernel(%arg0: i32, %arg1: memref<104x32xbf16, #tpu.memory_space<vmem>>, %arg2: memref<32x128xbf16, #tpu.memory_space<vmem>>, %arg3: memref<1x128xf32, #tpu.memory_space<vmem>>, %arg4: memref<128x10xbf16, #tpu.memory_space<vmem>>, %arg5: memref<1x10xf32, #tpu.memory_space<vmem>>, %arg6: memref<104x10xbf16, #tpu.memory_space<vmem>>) attributes {dimension_semantics = [#tpu.dimension_semantics<parallel>], iteration_bounds = array<i64: 2>, scalar_prefetch = 0 : i64, scratch_operands = 0 : i64, tpu.core_type = #tpu.core_type<tc>, window_params = [{transform_indices = @transform_0, window_bounds = array<i64: 104, 32>}, {pipeline_mode = #tpu.pipeline_mode<synchronous>, transform_indices = @transform_1, window_bounds = array<i64: 32, 128>}, {pipeline_mode = #tpu.pipeline_mode<synchronous>, transform_indices = @transform_2, window_bounds = array<i64: 1, 128>}, {pipeline_mode = #tpu.pipeline_mode<synchronous>, transform_indices = @transform_3, window_bounds = array<i64: 128, 10>}, {pipeline_mode = #tpu.pipeline_mode<synchronous>, transform_indices = @transform_4, window_bounds = array<i64: 1, 10>}, {transform_indices = @transform_5, window_bounds = array<i64: 104, 10>}]} {
    %c0 = arith.constant 0 : index
    %c0_0 = arith.constant 0 : index
    %0 = vector.load %arg1[%c0, %c0_0] : memref<104x32xbf16, #tpu.memory_space<vmem>>, vector<104x32xbf16>
    %c0_1 = arith.constant 0 : index
    %c0_2 = arith.constant 0 : index
    %1 = vector.load %arg2[%c0_1, %c0_2] : memref<32x128xbf16, #tpu.memory_space<vmem>>, vector<32x128xbf16>
    %cst = arith.constant dense<0.000000e+00> : vector<104x128xf32>
    %2 = tpu.matmul %0, %1, %cst {dimension_numbers = #tpu.dot_dimension_numbers<[1], [0], [0], [1], [0, 0, 1, 1], [], []>} : vector<104x32xbf16>, vector<32x128xbf16>, vector<104x128xf32> -> vector<104x128xf32>
    %c0_3 = arith.constant 0 : index
    %c0_4 = arith.constant 0 : index
    %3 = vector.load %arg3[%c0_3, %c0_4] : memref<1x128xf32, #tpu.memory_space<vmem>>, vector<1x128xf32>
    %4 = vector.broadcast %3 : vector<1x128xf32> to vector<104x128xf32>
    %5 = arith.addf %2, %4 : vector<104x128xf32>
    %cst_5 = arith.constant 0.000000e+00 : f32
    %6 = vector.broadcast %cst_5 : f32 to vector<104x128xf32>
    %7 = arith.maximumf %5, %6 : vector<104x128xf32>
    %8 = arith.truncf %7 : vector<104x128xf32> to vector<104x128xbf16>
    %c0_6 = arith.constant 0 : index
    %c0_7 = arith.constant 0 : index
    %9 = vector.load %arg4[%c0_6, %c0_7] : memref<128x10xbf16, #tpu.memory_space<vmem>>, vector<128x10xbf16>
    %cst_8 = arith.constant dense<0.000000e+00> : vector<104x10xf32>
    %10 = tpu.matmul %8, %9, %cst_8 {dimension_numbers = #tpu.dot_dimension_numbers<[1], [0], [0], [1], [0, 0, 1, 1], [], []>} : vector<104x128xbf16>, vector<128x10xbf16>, vector<104x10xf32> -> vector<104x10xf32>
    %c0_9 = arith.constant 0 : index
    %c0_10 = arith.constant 0 : index
    %11 = vector.load %arg5[%c0_9, %c0_10] : memref<1x10xf32, #tpu.memory_space<vmem>>, vector<1x10xf32>
    %12 = vector.broadcast %11 : vector<1x10xf32> to vector<104x10xf32>
    %13 = arith.addf %10, %12 : vector<104x10xf32>
    %14 = arith.truncf %13 : vector<104x10xf32> to vector<104x10xbf16>
    %c0_11 = arith.constant 0 : index
    %c0_12 = arith.constant 0 : index
    %15 = vector.load %arg6[%c0_11, %c0_12] : memref<104x10xbf16, #tpu.memory_space<vmem>>, vector<104x10xbf16>
    tpu.vector_store %arg6[%c0_11, %c0_12], %14 {strides = array<i32>} : memref<104x10xbf16, #tpu.memory_space<vmem>>, vector<104x10xbf16>,
    return
  }
  func.func @transform_0(%arg0: i32) -> (i32, i32) {
    %c0_i32 = arith.constant 0 : i32
    %c0_i32_0 = arith.constant 0 : i32
    return %arg0, %c0_i32 : i32, i32
  }
  func.func @transform_1(%arg0: i32) -> (i32, i32) {
    %c0_i32 = arith.constant 0 : i32
    %c0_i32_0 = arith.constant 0 : i32
    %c0_i32_1 = arith.constant 0 : i32
    return %c0_i32, %c0_i32_0 : i32, i32
  }
  func.func @transform_2(%arg0: i32) -> (i32, i32) {
    %c0_i32 = arith.constant 0 : i32
    %c0_i32_0 = arith.constant 0 : i32
    %c0_i32_1 = arith.constant 0 : i32
    return %c0_i32, %c0_i32_0 : i32, i32
  }
  func.func @transform_3(%arg0: i32) -> (i32, i32) {
    %c0_i32 = arith.constant 0 : i32
    %c0_i32_0 = arith.constant 0 : i32
    %c0_i32_1 = arith.constant 0 : i32
    return %c0_i32, %c0_i32_0 : i32, i32
  }
  func.func @transform_4(%arg0: i32) -> (i32, i32) {
    %c0_i32 = arith.constant 0 : i32
    %c0_i32_0 = arith.constant 0 : i32
    %c0_i32_1 = arith.constant 0 : i32
    return %c0_i32, %c0_i32_0 : i32, i32
  }
  func.func @transform_5(%arg0: i32) -> (i32, i32) {
    %c0_i32 = arith.constant 0 : i32
    %c0_i32_0 = arith.constant 0 : i32
    return %arg0, %c0_i32 : i32, i32
  }
}

</mosaic_0001>

<bundles_post_ra>
// kernel: toy_model_forward.1
= control target key start
LH: loop header
LB: loop body
LE: loop exit
PB: predicated region body
PF: predicated region fallthrough
CT: control target
= control target key end

     0   :  { %s1355_s18 = smov 0   ;;  %s1357_s19 = smov 0   ;;  %s1626_s0 = inlined_call_operand.vmem [shape: bf16[200,32], index: 0, kind: input, shape index: {}]   ;;  %s1627_s1 = inlined_call_operand.vmem [shape: bf16[32,128], index: 1, kind: input, shape index: {}]   ;;  %s1628_s2 = inlined_call_operand.vmem [shape: f32[1,128], index: 2, kind: input, shape index: {}]   ;;  %s1629_s3 = inlined_call_operand.vmem [shape: bf16[128,10], index: 3, kind: input, shape index: {}]   ;;  %s1630_s4 = inlined_call_operand.vmem [shape: f32[1,10], index: 4, kind: input, shape index: {}]   ;;  %s1631_s5 = inlined_call_operand.vmem [shape: bf16[200,10], index: 5, kind: output, shape index: {}]  }
   0x1   :  { %s1359_s20 = smov 0  }
   0x2 LB: > { %s1368_s21 = sadd.s32 4294967295, %s1289_s20   ;;  %s1370_s22 = sadd.s32 1, %s1289_s20   ;;  %s1289_s20 = sphi %s1359_s20, %s1638_s20   ;;  %s1285_s19 = sphi %s1357_s19, %s1637_s19   ;;  %s1281_s18 = sphi %s1355_s18, %s1636_s18  }
   0x3   : > { %s129_s23 = ssub.s32 %s1289_s20, %s1370_s22  ;;  %s132_s24 = sadd.s32 1, %s1285_s19 }
   0x4   : > { %p130_p0 = scmp.eq.s32.totalorder %s129_s23, 0  ;;  %p142_p1 = scmp.ne.s32.totalorder %s1285_s19, %s1281_s18 }
   0x5   : > { %p143_p2 = scmp.eq.s32.totalorder %s1368_s21, 1  ;;  %p939_p3 = scmp.ge.s32.totalorder %s1289_s20, 1 }
   0x6   : > { %s1378_s25 = scalar_select %p130_p0, %s1285_s19, %s132_s24  }
   0x7   : > { %p1380_p4 = por %p143_p2, %p142_p1  ;;  %p196_p5 = scmp.lt.s32.totalorder %s1289_s20, 3 }
   0x9   : > { %p197_p6 = pnand %p939_p3, %p196_p5 }
   0xa   : > { %v1214_v0 = vld [vmem:[%s1627_s1] sm:$0xff] (!%p197_p6)   ;;  %v1323_v1 = vmov (!%p197_p6), 0.0   ;;  %v1215_v2 = vld [vmem:[%s1627_s1 + $0x8] sm:$0xff] (!%p197_p6)   ;;  %vm1324_vm0 = vmmov (!%p197_p6), 0   ;;  %s1395_s6 = smul.u32 (!%p197_p6), 13, %s1368_s21  ;;  %vm316_vm1 = vcmask (!%p197_p6), 261120  }
   0xb   : > { %200 = sbr.rel (%p197_p6) target bundleno = 578 (0x242), region = 40  ;;  %1030 = vmatprep.subr.bf16.mxu0 (!%p197_p6), %v1323_v1  ;;  %1106 = vmatprep.subr.bf16.mxu1 (!%p197_p6), %v1323_v1  ;;  %v1223_v3 = vld [vmem:[%s1629_s3] sm:$0xff] (!%p197_p6)   ;;  %v1224_v4 = vld [vmem:[%s1629_s3 + $0x8] sm:$0xff] (!%p197_p6)   ;;  %v1225_v6 = vld [vmem:[%s1629_s3 + $0x10] sm:$0xff] (!%p197_p6)   ;;  %vm658_vm2 = vcmask (!%p197_p6), 76800  }
   0xc   : > { %1031 = vmatpush3.bf16.msra.mxu0 (!%p197_p6), %v1214_v0  ;;  %1034 = vmatprep.mubr.msk.bf16.mxu0 (!%p197_p6), %vm1324_vm0, %v1323_v1  ;;  %p232_p7 = scmp.lt.s32.totalorder (!%p197_p6), %s1395_s6, 24  ;;  %v1226_v8 = vld [vmem:[%s1629_s3 + $0x18] sm:$0xff] (!%p197_p6)   ;;  %v1227_v9 = vld [vmem:[%s1629_s3 + $0x20] sm:$0xff] (!%p197_p6)   ;;  %v1228_v11 = vld [vmem:[%s1629_s3 + $0x28] sm:$0xff] (!%p197_p6)  }
   0xd   : > { %1032 = vmatprep.subr.bf16.mxu0 (!%p197_p6), %v1323_v1  ;;  %1082 = vmatprep.mubr.msk.bf16.mxu1 (!%p197_p6), %vm1324_vm0, %v1323_v1  ;;  %v1229_v16 = vld [vmem:[%s1629_s3 + $0x30] sm:$0xff] (!%p197_p6)   ;;  %v1230_v17 = vld [vmem:[%s1629_s3 + $0x38] sm:$0xff] (!%p197_p6)   ;;  %v1477_v18 = vld [vmem:[%s1628_s2] ss:$0 sm:$0xff] (!%p197_p6) }
   0xe   : > { %1114 = vmatpush3.bf16.msra.mxu1 (!%p197_p6), %v1223_v3 }
   0xf   : > { %1107 = vmatprep.subr.bf16.mxu1 (!%p197_p6), %v1323_v1 }
  0x10   : > { %1033 = vmatpush3.bf16.msra.mxu0 (!%p197_p6), %v1215_v2 }
  0x11   : > { %1062 = vmatprep.subr.bf16.mxu0 (!%p197_p6), %v1323_v1 }
  0x12   : > { %s233_s9 = scalar_select %p232_p7, %s1395_s6, 24  ;;  %1115 = vmatpush3.bf16.msra.mxu1 %v1224_v4 }
  0x13   : > { %1108 = vmatprep.subr.bf16.mxu1 %v1323_v1  ;;  %s1005_s17 = smul.u32 (%p1380_p4), 52, %s1368_s21 }
  0x14   : > { %s940_s12 = sshll.u32 %s233_s9, 2 }
  0x15   : > { %s1413_s15 = scalar_lea.vmem %s1626_s0, %s940_s12  ;;  %s224_s12 = sand.u32 1, %s1281_s18  }
  0x16   : > { %v1216_v5 = vld [vmem:[%s1413_s15] sm:$0xff]   ;;  %1116 = vmatpush3.bf16.msra.mxu1 %v1225_v6  ;;  %v1217_v7 = vld [vmem:[%s1413_s15 + $0x8] sm:$0xff]   ;;  %v1218_v10 = vld [vmem:[%s1413_s15 + $0x10] sm:$0xff]   ;;  %s1122_s13 = smul.u32 52, %s224_s12  ;;  %s680_s18 = ssub.s32 (%p1380_p4), 25, %s1395_s6 }
  0x17   : > { %1035 = vmatmul.mubr.msk.bf16.vlgmr.msra.gmra.mrb[0].mxu0 %vm316_vm1, %v1216_v5  ;;  %1109 = vmatprep.subr.bf16.mxu1 %v1323_v1  ;;  %v1219_v12 = vld [vmem:[%s1413_s15 + $0x18] sm:$0xff]   ;;  %v1220_v13 = vld [vmem:[%s1413_s15 + $0x20] sm:$0xff]   ;;  %v1221_v14 = vld [vmem:[%s1413_s15 + $0x28] sm:$0xff]   ;;  %p681_p8 = scmp.lt.s32.totalorder (%p1380_p4), %s680_s18, 13  ;;  %s1556_s24 = scalar_lea.vmem (%p1380_p4), %s1631_s5, %s1005_s17  }
  0x18   : > { %1038 = vmatprep.mubr.msk.bf16.mxu0 %vm1324_vm0, %v1323_v1  ;;  %1063 = vmatpush3.bf16.msra.mxu0 %v1223_v3  ;;  %v1222_v15 = vld [vmem:[%s1413_s15 + $0x30] ss:$0 sps:$4 sm:$0xff]   ;;  %s1510_s16 = scalar_lea.vmem [#allocation2], %s1122_s13  }
  0x19   : > { %1064 = vmatprep.subr.bf16.mxu0 %v1323_v1 }
  0x1a   : > { %1117 = vmatpush3.bf16.msra.mxu1 %v1226_v8 }
  0x1b   : > { %1110 = vmatprep.subr.bf16.mxu1 %v1323_v1 }
  0x1c   : > { %1065 = vmatpush3.bf16.msra.mxu0 %v1224_v4 }
  0x1d   : > { %1066 = vmatprep.subr.bf16.mxu0 %v1323_v1 }
  0x1e   : > { %1118 = vmatpush3.bf16.msra.mxu1 %v1227_v9 }
  0x1f   : > { %1039 = vmatmul.mubr.msk.bf16.gmra.mrb[4].mxu0 %vm316_vm1, %v1217_v7  ;;  %1111 = vmatprep.subr.bf16.mxu1 %v1323_v1 }
  0x20   : > { %1042 = vmatprep.mubr.msk.bf16.mxu0 %vm1324_vm0, %v1323_v1  ;;  %1067 = vmatpush3.bf16.msra.mxu0 %v1225_v6 }
  0x21   : > { %1068 = vmatprep.subr.bf16.mxu0 %v1323_v1 }
  0x22   : > { %1119 = vmatpush3.bf16.msra.mxu1 %v1228_v11 }
  0x23   : > { %1112 = vmatprep.subr.bf16.mxu1 %v1323_v1 }
  0x24   : > { %1069 = vmatpush3.bf16.msra.mxu0 %v1226_v8 }
  0x25   : > { %1070 = vmatprep.subr.bf16.mxu0 %v1323_v1 }
  0x26   : > { %1120 = vmatpush3.bf16.msra.mxu1 %v1229_v16 }
  0x27   : > { %1043 = vmatmul.mubr.msk.bf16.gmra.mrb[8].mxu0 %vm316_vm1, %v1218_v10  ;;  %1113 = vmatprep.subr.bf16.mxu1 %v1323_v1 }
  0x28   : > { %1046 = vmatprep.mubr.msk.bf16.mxu0 %vm1324_vm0, %v1323_v1  ;;  %1071 = vmatpush3.bf16.msra.mxu0 %v1227_v9 }
  0x29   : > { %1072 = vmatprep.subr.bf16.mxu0 %v1323_v1 }
  0x2a   : > { %1121 = vmatpush3.bf16.msra.mxu1 %v1230_v17 }
  0x2c   : > { %1073 = vmatpush3.bf16.msra.mxu0 %v1228_v11 }
  0x2d   : > { %1074 = vmatprep.subr.bf16.mxu0 %v1323_v1 }
  0x2f   : > { %1047 = vmatmul.mubr.msk.bf16.gmra.mrb[12].mxu0 %vm316_vm1, %v1219_v12 }
  0x30   : > { %1050 = vmatprep.mubr.msk.bf16.mxu0 %vm1324_vm0, %v1323_v1  ;;  %1075 = vmatpush3.bf16.msra.mxu0 %v1229_v16 }
  0x31   : > { %1076 = vmatprep.subr.bf16.mxu0 %v1323_v1 }
  0x34   : > { %1077 = vmatpush3.bf16.msra.mxu0 %v1230_v17  ;;  %v1506_v17 = vld [vmem:[%s1630_s4] ss:$0 sm:$0xff] }
  0x37   : > { %1051 = vmatmul.mubr.msk.bf16.gmra.mrb[16].mxu0 %vm316_vm1, %v1220_v13 }
  0x38   : > { %1054 = vmatprep.mubr.msk.bf16.mxu0 %vm1324_vm0, %v1323_v1 }
  0x3f   : > { %1055 = vmatmul.mubr.msk.bf16.gmra.mrb[20].mxu0 %vm316_vm1, %v1221_v14 }
  0x40   : > { %1058 = vmatprep.mubr.msk.bf16.mxu0 %vm1324_vm0, %v1323_v1 }
  0x47   : > { %1059 = vmatmul.mubr.msk.bf16.gmra.mrb[24].mxu0 %vm316_vm1, %v1222_v15 }
  0x48   : > { %1078 = vmatprep.mubr.msk.bf16.mxu0 %vm1324_vm0, %v1323_v1 }
  0xea   : > { %v372_v19 = vpop.f32.mrb[0].mxu0 }
  0xeb   : > { %v373_v20 = vadd.f32 %v1477_v18, %v372_v19  ;;  %v1036_v21 = vpop.f32.mrb[1].mxu0 }
  0xec   : > { %v375_v22 = vpop.f32.mrb[2].mxu0 }
  0xed   : > { %v376_v23 = vadd.f32 %v1477_v18, %v375_v22  ;;  %v1037_v24 = vpop.f32.mrb[3].mxu0  ;;  %v426_v25 = vmax.f32 %v373_v20, 0.0 }
  0xef   : > { %v427_v26 = vmax.f32 %v376_v23, 0.0 }
  0xf1   : > { %v439_v27 = vpack.c.bf16 %v427_v26, %v426_v25 }
  0xf2   : > { %v380_v28 = vpop.f32.mrb[4].mxu0 }
  0xf3   : > { %v381_v29 = vadd.f32 %v1477_v18, %v380_v28  ;;  %v1040_v30 = vpop.f32.mrb[5].mxu0  ;;  %1079 = vmatmul.mubr.bf16.vlgmr.msra.gmra.mrb[28].mxu0 %v439_v27 }
  0xf4   : > { %v383_v31 = vpop.f32.mrb[6].mxu0 }
  0xf5   : > { %v384_v32 = vadd.f32 %v1477_v18, %v383_v31  ;;  %v1041_v33 = vpop.f32.mrb[7].mxu0  ;;  %v428_v34 = vmax.f32 %v381_v29, 0.0 }
  0xf7   : > { %v429_v35 = vmax.f32 %v384_v32, 0.0 }
  0xf9   : > { %v440_v36 = vpack.c.bf16 %v429_v35, %v428_v34 }
  0xfa   : > { %v388_v37 = vpop.f32.mrb[8].mxu0 }
  0xfb   : > { %v389_v38 = vadd.f32 %v1477_v18, %v388_v37  ;;  %v1044_v39 = vpop.f32.mrb[9].mxu0  ;;  %1083 = vmatmul.mubr.bf16.vlgmr.msra.gmra.mrb[0].mxu1 %v440_v36 }
  0xfc   : > { %v391_v40 = vpop.f32.mrb[10].mxu0  ;;  %1086 = vmatprep.mubr.msk.bf16.mxu1 %vm1324_vm0, %v1323_v1 }
  0xfd   : > { %v392_v41 = vadd.f32 %v1477_v18, %v391_v40  ;;  %v1045_v42 = vpop.f32.mrb[11].mxu0  ;;  %v430_v43 = vmax.f32 %v389_v38, 0.0 }
  0xff   : > { %v431_v44 = vmax.f32 %v392_v41, 0.0 }
 0x101   : > { %v441_v45 = vpack.c.bf16 %v431_v44, %v430_v43 }
 0x102   : > { %v396_v46 = vpop.f32.mrb[12].mxu0 }
 0x103   : > { %v397_v47 = vadd.f32 %v1477_v18, %v396_v46  ;;  %v1048_v48 = vpop.f32.mrb[13].mxu0  ;;  %1087 = vmatmul.mubr.bf16.gmra.mrb[4].mxu1 %v441_v45 }
 0x104   : > { %v399_v49 = vpop.f32.mrb[14].mxu0  ;;  %1090 = vmatprep.mubr.msk.bf16.mxu1 %vm1324_vm0, %v1323_v1 }
 0x105   : > { %v400_v50 = vadd.f32 %v1477_v18, %v399_v49  ;;  %v1049_v51 = vpop.f32.mrb[15].mxu0  ;;  %v432_v52 = vmax.f32 %v397_v47, 0.0 }
 0x107   : > { %v433_v53 = vmax.f32 %v400_v50, 0.0 }
 0x109   : > { %v442_v54 = vpack.c.bf16 %v433_v53, %v432_v52 }
 0x10a   : > { %v404_v55 = vpop.f32.mrb[16].mxu0 }
 0x10b   : > { %v405_v56 = vadd.f32 %v1477_v18, %v404_v55  ;;  %v1052_v57 = vpop.f32.mrb[17].mxu0  ;;  %1091 = vmatmul.mubr.bf16.gmra.mrb[8].mxu1 %v442_v54 }
 0x10c   : > { %v407_v58 = vpop.f32.mrb[18].mxu0  ;;  %1094 = vmatprep.mubr.msk.bf16.mxu1 %vm1324_vm0, %v1323_v1 }
 0x10d   : > { %v408_v59 = vadd.f32 %v1477_v18, %v407_v58  ;;  %v1053_v60 = vpop.f32.mrb[19].mxu0  ;;  %v434_v61 = vmax.f32 %v405_v56, 0.0 }
 0x10f   : > { %v435_v62 = vmax.f32 %v408_v59, 0.0 }
 0x111   : > { %v443_v63 = vpack.c.bf16 %v435_v62, %v434_v61 }
 0x112   : > { %v412_v0 = vpop.f32.mrb[20].mxu0 }
 0x113   : > { %v413_v2 = vadd.f32 %v1477_v18, %v412_v0  ;;  %v1056_v3 = vpop.f32.mrb[21].mxu0  ;;  %1095 = vmatmul.mubr.bf16.gmra.mrb[12].mxu1 %v443_v63 }
 0x114   : > { %v415_v4 = vpop.f32.mrb[22].mxu0  ;;  %1098 = vmatprep.mubr.msk.bf16.mxu1 %vm1324_vm0, %v1323_v1 }
 0x115   : > { %v416_v5 = vadd.f32 %v1477_v18, %v415_v4  ;;  %v1057_v6 = vpop.f32.mrb[23].mxu0  ;;  %v436_v7 = vmax.f32 %v413_v2, 0.0 }
 0x117   : > { %v437_v8 = vmax.f32 %v416_v5, 0.0 }
 0x119   : > { %v444_v9 = vpack.c.bf16 %v437_v8, %v436_v7 }
 0x11a   : > { %v420_v10 = vpop.f32.mrb[24].mxu0 }
 0x11b   : > { %v421_v11 = vadd.f32 %v1477_v18, %v420_v10  ;;  %v1060_v12 = vpop.f32.mrb[25].mxu0  ;;  %1099 = vmatmul.mubr.bf16.gmra.mrb[16].mxu1 %v444_v9 }
 0x11c   : > { %v423_v13 = vpop.f32.mrb[26].mxu0  ;;  %1102 = vmatprep.mubr.msk.bf16.mxu1 %vm1324_vm0, %v1323_v1 }
 0x11d   : > { %v438_v14 = vmax.f32 %v421_v11, 0.0  ;;  %v1061_v15 = vpop.f32.mrb[27].mxu0 }
 0x11f   : > { %v445_v16 = vpack.c.bf16 %v438_v14, %v438_v14 }
 0x123   : > { %1103 = vmatmul.mubr.bf16.gmra.mrb[20].mxu1 %v445_v16 }
 0x1c6   : > { %v551_v19 = vpop.f32.mrb[28].mxu0 }
 0x1c7   : > { %v552_v18 = vadd.f32 %v1506_v17, %v551_v19  ;;  %v1080_v20 = vpop.f32.mrb[29].mxu0 }
 0x1c8   : > { %v554_v21 = vpop.f32.mrb[30].mxu0 }
 0x1c9   : > { %v992_v22 = vpack.c.bf16 %v552_v18, %v552_v18  ;;  %v555_v1 = vadd.f32 %v1506_v17, %v554_v21  ;;  %v1081_v23 = vpop.f32.mrb[31].mxu0 }
 0x1cb   : > { %659 = vst.msk [vmem:[%s1510_s16] sm:$0xf] %vm658_vm2, %v992_v22  ;;  %v993_v24 = vpack.c.bf16 %v555_v1, %v555_v1 }
 0x1cd   : > { %660 = vst.msk [vmem:[%s1510_s16 + $0x4] sm:$0xf] %vm658_vm2, %v993_v24 }
 0x1ce   : > { %v559_v25 = vpop.f32.mrb[0].mxu1 }
 0x1cf   : > { %v560_v26 = vadd.f32 %v1506_v17, %v559_v25  ;;  %v1084_v27 = vpop.f32.mrb[1].mxu1 }
 0x1d0   : > { %v562_v28 = vpop.f32.mrb[2].mxu1 }
 0x1d1   : > { %v994_v29 = vpack.c.bf16 %v560_v26, %v560_v26  ;;  %v563_v30 = vadd.f32 %v1506_v17, %v562_v28  ;;  %v1085_v31 = vpop.f32.mrb[3].mxu1 }
 0x1d3   : > { %661 = vst.msk [vmem:[%s1510_s16 + $0x8] sm:$0xf] %vm658_vm2, %v994_v29  ;;  %v995_v32 = vpack.c.bf16 %v563_v30, %v563_v30 }
 0x1d5   : > { %662 = vst.msk [vmem:[%s1510_s16 + $0xc] sm:$0xf] %vm658_vm2, %v995_v32 }
 0x1d6   : > { %v567_v33 = vpop.f32.mrb[4].mxu1 }
 0x1d7   : > { %v568_v34 = vadd.f32 %v1506_v17, %v567_v33  ;;  %v1088_v35 = vpop.f32.mrb[5].mxu1 }
 0x1d8   : > { %v570_v36 = vpop.f32.mrb[6].mxu1 }
 0x1d9   : > { %v996_v37 = vpack.c.bf16 %v568_v34, %v568_v34  ;;  %v571_v38 = vadd.f32 %v1506_v17, %v570_v36  ;;  %v1089_v39 = vpop.f32.mrb[7].mxu1 }
 0x1db   : > { %663 = vst.msk [vmem:[%s1510_s16 + $0x10] sm:$0xf] %vm658_vm2, %v996_v37  ;;  %v997_v40 = vpack.c.bf16 %v571_v38, %v571_v38 }
 0x1dd   : > { %664 = vst.msk [vmem:[%s1510_s16 + $0x14] sm:$0xf] %vm658_vm2, %v997_v40 }
 0x1de   : > { %v575_v41 = vpop.f32.mrb[8].mxu1 }
 0x1df   : > { %v576_v42 = vadd.f32 %v1506_v17, %v575_v41  ;;  %v1092_v43 = vpop.f32.mrb[9].mxu1 }
 0x1e0   : > { %v578_v44 = vpop.f32.mrb[10].mxu1 }
 0x1e1   : > { %v998_v45 = vpack.c.bf16 %v576_v42, %v576_v42  ;;  %v579_v46 = vadd.f32 %v1506_v17, %v578_v44  ;;  %v1093_v47 = vpop.f32.mrb[11].mxu1 }
 0x1e3   : > { %665 = vst.msk [vmem:[%s1510_s16 + $0x18] sm:$0xf] %vm658_vm2, %v998_v45  ;;  %v999_v48 = vpack.c.bf16 %v579_v46, %v579_v46 }
 0x1e5   : > { %666 = vst.msk [vmem:[%s1510_s16 + $0x1c] sm:$0xf] %vm658_vm2, %v999_v48 }
 0x1e6   : > { %v583_v49 = vpop.f32.mrb[12].mxu1 }
 0x1e7   : > { %v584_v50 = vadd.f32 %v1506_v17, %v583_v49  ;;  %v1096_v51 = vpop.f32.mrb[13].mxu1 }
 0x1e8   : > { %v586_v52 = vpop.f32.mrb[14].mxu1 }
 0x1e9   : > { %v1000_v53 = vpack.c.bf16 %v584_v50, %v584_v50  ;;  %v587_v54 = vadd.f32 %v1506_v17, %v586_v52  ;;  %v1097_v55 = vpop.f32.mrb[15].mxu1 }
 0x1eb   : > { %667 = vst.msk [vmem:[%s1510_s16 + $0x20] sm:$0xf] %vm658_vm2, %v1000_v53  ;;  %v1001_v56 = vpack.c.bf16 %v587_v54, %v587_v54 }
 0x1ed   : > { %668 = vst.msk [vmem:[%s1510_s16 + $0x24] sm:$0xf] %vm658_vm2, %v1001_v56 }
 0x1ee   : > { %v591_v57 = vpop.f32.mrb[16].mxu1 }
 0x1ef   : > { %v592_v58 = vadd.f32 %v1506_v17, %v591_v57  ;;  %v1100_v59 = vpop.f32.mrb[17].mxu1 }
 0x1f0   : > { %v594_v60 = vpop.f32.mrb[18].mxu1 }
 0x1f1   : > { %v1002_v61 = vpack.c.bf16 %v592_v58, %v592_v58  ;;  %v595_v62 = vadd.f32 %v1506_v17, %v594_v60  ;;  %v1101_v63 = vpop.f32.mrb[19].mxu1 }
 0x1f3   : > { %669 = vst.msk [vmem:[%s1510_s16 + $0x28] sm:$0xf] %vm658_vm2, %v1002_v61  ;;  %v1003_v0 = vpack.c.bf16 %v595_v62, %v595_v62 }
 0x1f5   : > { %670 = vst.msk [vmem:[%s1510_s16 + $0x2c] sm:$0xf] %vm658_vm2, %v1003_v0  ;;  %678 = sbr.rel (!%p1380_p4) target bundleno = 578 (0x242), region = 44 }
 0x1f6   : > { %v599_v2 = vpop.f32.mrb[20].mxu1 }
 0x1f7   : > { %v600_v3 = vadd.f32 %v1506_v17, %v599_v2  ;;  %v1104_v4 = vpop.f32.mrb[21].mxu1 }
 0x1f8   : > { %v602_v5 = vpop.f32.mrb[22].mxu1 }
 0x1f9   : > { %v1004_v6 = vpack.c.bf16 %v600_v3, %v600_v3  ;;  %v1105_v7 = vpop.f32.mrb[23].mxu1 }
 0x1fb   : > { %671 = vst.msk [vmem:[%s1510_s16 + $0x30] sm:$0xf] %vm658_vm2, %v1004_v6 }
 0x1fc   : > { %s1640_s18 = smov (!%p681_p8, %s680_s18), 13 }
 0x1fd   : > { %s980_s27 = sshll.u32 %s1640_s18, 6 }
 0x1fe   : > { %p983_p9 = scmp.eq.s32.totalorder %s980_s27, 0 }
 0x1ff   : > { %1231 = sdivrem.u32 (!%p983_p9), %s1640_s18, 13 }
 0x200   : > { %689 = sbr.rel (%p983_p9) target bundleno = 578 (0x242), region = 48 }
 0x208   : > { %s1562_s26 = spop.drf %1231 }
 0x209   : > { %p984_p10 = scmp.le.s32.totalorder %s1562_s26, 0 }
 0x20a   : > { %s1633_s21 = smov (!%p984_p10), %s1556_s24  ;;  %s1634_s6 = smov (!%p984_p10), %s1510_s16 }
 0x20b   : > { %892 = sbr.rel (%p984_p10) target bundleno = 549 (0x225), region = 120  ;;  %s1571_s28 = smov (!%p984_p10), 0  }
 0x20c   : > { %s1573_s29 = smov (!%p984_p10), 0  }
 0x212 LB: >> { %v706_v8 = vld [vmem:[%s1297_s6] sm:$0xf]  ;;  %v708_v9 = vld [vmem:[%s1297_s6 + $0x4] sm:$0xf]  ;;  %v710_v10 = vld [vmem:[%s1297_s6 + $0x8] sm:$0xf]  ;;  %s1305_s29 = sphi %s1573_s29, %s700_s29   ;;  %s1301_s28 = sphi %s1571_s28, %s1635_s28   ;;  %s1297_s6 = sphi %s1634_s6, %s737_s6   ;;  %s1293_s21 = sphi %s1633_s21, %s738_s21  }
 0x213   : >> { %707 = vst [vmem:[%s1293_s21] sm:$0xf] %v706_v8  ;;  %709 = vst [vmem:[%s1293_s21 + $0x4] sm:$0xf] %v708_v9  ;;  %v712_v11 = vld [vmem:[%s1297_s6 + $0xc] sm:$0xf]  ;;  %s732_s30 = sadd.s32 1, %s1301_s28 }
 0x214   : >> { %711 = vst [vmem:[%s1293_s21 + $0x8] sm:$0xf] %v710_v10  ;;  %v714_v12 = vld [vmem:[%s1297_s6 + $0x10] sm:$0xf]  ;;  %v716_v13 = vld [vmem:[%s1297_s6 + $0x14] sm:$0xf]  ;;  %p733_p11 = scmp.ge.s32.totalorder %s732_s30, %s1562_s26 }
 0x215   : >> { %713 = vst [vmem:[%s1293_s21 + $0xc] sm:$0xf] %v712_v11  ;;  %715 = vst [vmem:[%s1293_s21 + $0x10] sm:$0xf] %v714_v12  ;;  %v718_v14 = vld [vmem:[%s1297_s6 + $0x18] sm:$0xf] }
 0x216   : >> { %717 = vst [vmem:[%s1293_s21 + $0x14] sm:$0xf] %v716_v13  ;;  %v720_v15 = vld [vmem:[%s1297_s6 + $0x1c] sm:$0xf]  ;;  %v722_v16 = vld [vmem:[%s1297_s6 + $0x20] sm:$0xf] }
 0x217   : >> { %719 = vst [vmem:[%s1293_s21 + $0x18] sm:$0xf] %v718_v14  ;;  %721 = vst [vmem:[%s1293_s21 + $0x1c] sm:$0xf] %v720_v15  ;;  %v724_v17 = vld [vmem:[%s1297_s6 + $0x24] sm:$0xf] }
 0x218   : >> { %723 = vst [vmem:[%s1293_s21 + $0x20] sm:$0xf] %v722_v16  ;;  %v726_v19 = vld [vmem:[%s1297_s6 + $0x28] sm:$0xf]  ;;  %v728_v18 = vld [vmem:[%s1297_s6 + $0x2c] sm:$0xf] }
 0x219   : >> { %725 = vst [vmem:[%s1293_s21 + $0x24] sm:$0xf] %v724_v17  ;;  %727 = vst [vmem:[%s1293_s21 + $0x28] sm:$0xf] %v726_v19  ;;  %v730_v20 = vld [vmem:[%s1297_s6 + $0x30] sm:$0xf] }
 0x21a   : >> { %729 = vst [vmem:[%s1293_s21 + $0x2c] sm:$0xf] %v728_v18  ;;  %731 = vst [vmem:[%s1293_s21 + $0x30] sm:$0xf] %v730_v20  ;;  %s1642_s30 = smov (%p733_p11, %s732_s30), 0  ;;  %s700_s29 = sadd.s32 1, %s1305_s29  }
 0x21b   : >> { %s735_s7 = smul.u32 52, %s1642_s30  ;;  %p699_p12 = scmp.ge.s32.totalorder %s700_s29, %s1562_s26 }
 0x21c   : >> { %s1635_s28 = smov %s1642_s30 }
 0x21d   : >> { %s737_s6 = scalar_lea.vmem %s1510_s16, %s735_s7 [#allocation2]   ;;  %s738_s21 = scalar_lea.vmem %s1556_s24, %s735_s7  }
 0x21e   : > { %702 = sbr.rel (!%p699_p12) target bundleno = 530 (0x212), region = 126 }
 0x225 PF: > { %1233 = sdivrem.u32 %s1640_s18, 13 }
 0x226   : > { %s985_s8 = smul.u32 52, %s1562_s26 }
 0x228   : > { %s743_s9 = scalar_lea.vmem %s1510_s16, %s985_s8 [#allocation2]   ;;  %s745_s10 = scalar_lea.vmem %s1556_s24, %s985_s8  }
 0x22e   : > { %s1234_s11 = spop.drf %1233 }
 0x22f   : > { %p987_p13 = scmp.le.s32.totalorder %s1234_s11, 0 }
 0x230   : > { %s1307_s12 = smov (!%p987_p13), %s745_s10   ;;  %s1311_s13 = smov (!%p987_p13), %s743_s9  }
 0x231   : > { %906 = sbr.rel (%p987_p13) target bundleno = 578 (0x242), region = 131  ;;  %s1315_s14 = smov (!%p987_p13), 0  }
 0x232   : > { %s1319_s15 = smov (!%p987_p13), 0  }
 0x238 LB: >> { %v755_v21 = vld [vmem:[%s1313_s13] sm:$0xf]  ;;  %s757_s17 = sadd.s32 1, %s1317_s14  ;;  %s749_s15 = sadd.s32 1, %s1321_s15   ;;  %s1321_s15 = sphi %s1319_s15, %s749_s15   ;;  %s1317_s14 = sphi %s1315_s14, %s1316_s14   ;;  %s1313_s13 = sphi %s1311_s13, %s762_s13   ;;  %s1309_s12 = sphi %s1307_s12, %s763_s12  }
 0x239   : >> { %756 = vst [vmem:[%s1309_s12] sm:$0xf] %v755_v21  ;;  %p758_p0 = scmp.ge.s32.totalorder %s757_s17, %s1234_s11  ;;  %p748_p1 = scmp.ge.s32.totalorder %s749_s15, %s1234_s11 }
 0x23b   : >> { %s1644_s17 = smov (%p758_p0, %s757_s17), 0  ;;  %751 = sbr.rel (!%p748_p1) target bundleno = 568 (0x238), region = 137 }
 0x23c   : >> { %s988_s16 = sshll.u32 %s1644_s17, 2  ;;  %s1316_s14 = smov %s1644_s17  }
 0x23d   : >> { %s762_s13 = scalar_lea.vmem %s743_s9, %s988_s16 [#allocation2]   ;;  %s763_s12 = scalar_lea.vmem %s745_s10, %s988_s16  }
 0x242 PF: > { %p12_p2 = scmp.ge.s32.totalorder %s1370_s22, 4   ;;  %s1636_s18 = smov %s1285_s19 }
 0x243   : > { %s1637_s19 = smov %s1378_s25  ;;  %s1638_s20 = smov %s1370_s22 }
 0x244   :  { %14 = sbr.rel (!%p12_p2) target bundleno = 2 (0x2), region = 148 }

</bundles_post_ra>
